<compile_context>
chip_gen: v7x
topology: tpu7x:2x2x1
jax: 0.10.0
libtpu: 0.0.40
codegen_flags: <defaults>
</compile_context>

<pallas_src>
import functools

import jax
import jax.numpy as jnp
from jax.experimental import pallas as pl
from jax.experimental.pallas import tpu as pltpu

BN_EPS = 1e-5


# ----------------------------------------------------------------------------
# Pallas kernel (transposed layout: activations are (features, block_b))
# ----------------------------------------------------------------------------
def make_cvae_kernel(num_hidden: int, input_dim: int, condition_dim: int,
                     latent_dim: int):
    xc_rows = input_dim + condition_dim

    def kernel(*refs):
        in_ref = refs[0]                       # (F_in, bB) = [x; cond; eps]^T
        w_refs = refs[1:-1]
        out_ref = refs[-1]                     # (input_dim + 2*latent, bB)

        it = iter(w_refs)
        slab = in_ref[...]                     # f32
        xc = slab[:xc_rows, :]                 # (in+cond, bB)
        cond = slab[input_dim:xc_rows, :]      # (cond, bB)
        eps = slab[xc_rows:xc_rows + latent_dim, :]   # (latent, bB)

        # ------------- encoder: [Linear (+BN folded) -> ReLU -> Dropout(id)]*n
        h = xc.astype(jnp.bfloat16)
        for _ in range(num_hidden):
            W = next(it)[...]                  # bf16 (d_out, d_in), BN folded
            s = next(it)[...]                  # f32  (d_out, 1)
            pre = jnp.dot(W, h, preferred_element_type=jnp.float32) + s
            h = jnp.maximum(pre, 0.0).astype(jnp.bfloat16)

        # ------------- fused mu / log_var head: one MXU push
        W_head = next(it)[...]                 # (2*latent, hidden)
        b_head = next(it)[...]                 # (2*latent, 1)
        head = jnp.dot(W_head, h, preferred_element_type=jnp.float32) + b_head
        mu = head[:latent_dim, :]              # sublane slices
        log_var = head[latent_dim:, :]

        # ------------- reparameterize: z = mu + eps * exp(0.5 * log_var)
        z = mu + eps * jnp.exp(0.5 * log_var)  # f32

        # ------------- decoder (layer 0 keeps z/cond split: z is in-kernel)
        cond_bf = cond.astype(jnp.bfloat16)
        h = z.astype(jnp.bfloat16)
        for li in range(num_hidden):
            if li == 0:
                Wz = next(it)[...]             # (d_out, latent)
                Wc = next(it)[...]             # (d_out, cond)
                s = next(it)[...]
                pre = (jnp.dot(Wz, h, preferred_element_type=jnp.float32)
                       + jnp.dot(Wc, cond_bf, preferred_element_type=jnp.float32)
                       + s)
            else:
                W = next(it)[...]
                s = next(it)[...]
                pre = jnp.dot(W, h, preferred_element_type=jnp.float32) + s
            h = jnp.maximum(pre, 0.0).astype(jnp.bfloat16)

        W_out = next(it)[...]                  # (input_dim, hidden_dims[0])
        b_out = next(it)[...]                  # (input_dim, 1)
        x_rec = jnp.dot(W_out, h, preferred_element_type=jnp.float32) + b_out

        # ------------- lane-dense output slab, sublane-aligned row offsets
        out_ref[:input_dim, :] = x_rec
        out_ref[input_dim:input_dim + latent_dim, :] = mu
        out_ref[input_dim + latent_dim:, :] = log_var

    return kernel


# ----------------------------------------------------------------------------
# Wrapper
# ----------------------------------------------------------------------------
@functools.partial(
    jax.jit,
    static_argnames=("input_dim", "condition_dim", "latent_dim",
                     "num_hidden", "block_b"))
def cvae_forward(x, cond, eps, params, *, input_dim, condition_dim,
                 latent_dim, num_hidden, block_b=None):
    B = x.shape[0]
    if block_b is None:
        # 256 fills v6e/v7x MXU depth; 128 keeps grid >= 2 for moderate B
        # (so both v7x TensorCores get work).  Always a multiple of 128 so the
        # lane axis of every tile is dense / unmasked.
        block_b = 256 if B >= 512 else 128
    Bp = ((B + block_b - 1) // block_b) * block_b       # ragged-batch padding

    # One input slab: [x, cond, eps]; transpose is cheap XLA outside the kernel.
    slab = jnp.concatenate([x, cond, eps], axis=1)      # (B, F_in)
    if Bp != B:
        slab = jnp.pad(slab, ((0, Bp - B), (0, 0)))
    slab_t = slab.T                                     # (F_in, Bp) batch-on-lanes
    f_in = slab_t.shape[0]

    kernel = make_cvae_kernel(num_hidden, input_dim, condition_dim, latent_dim)

    def w_spec(arr):    # VMEM-resident weights (constant block index)
        return pl.BlockSpec(arr.shape, lambda i: (0, 0))

    in_specs = ([pl.BlockSpec((f_in, block_b), lambda i: (0, i))]
                + [w_spec(p) for p in params])

    out_rows = input_dim + 2 * latent_dim
    out_spec = pl.BlockSpec((out_rows, block_b), lambda i: (0, i))
    out_shape = jax.ShapeDtypeStruct((out_rows, Bp), jnp.float32)

    packed_t = pl.pallas_call(
        kernel,
        out_shape=out_shape,
        grid_spec=pltpu.PrefetchScalarGridSpec(
            num_scalar_prefetch=0,
            grid=(Bp // block_b,),
            in_specs=in_specs,
            out_specs=out_spec,
        ),
        compiler_params=pltpu.CompilerParams(
            dimension_semantics=("parallel",),
            vmem_limit_bytes=32 * 1024 * 1024,   # safe on v5e/v6e/v7x (see header)
        ),
    )(slab_t, *params)

    packed = packed_t.T[:B]                              # strip batch padding
    x_rec = packed[:, :input_dim]
    mu = packed[:, input_dim:input_dim + latent_dim]
    log_var = packed[:, input_dim + latent_dim:]
    return x_rec, mu, log_var


# ----------------------------------------------------------------------------
# Deterministic raw-parameter construction (shapes follow the PyTorch __init__)
# ----------------------------------------------------------------------------
def init_raw_params(key, input_dim, condition_dim, latent_dim, hidden_dims):
    keys = iter(jax.random.split(key, 128))

    def linear(d_in, d_out):
        kw, kb = jax.random.split(next(keys))
        W = 0.05 * jax.random.normal(kw, (d_in, d_out), jnp.float32)
        b = 0.01 * jax.random.normal(kb, (1, d_out), jnp.float32)
        return W, b

    def bn(dim):
        kg, kb2, km, kv = jax.random.split(next(keys), 4)
        gamma = 1.0 + 0.1 * jax.random.normal(kg, (1, dim), jnp.float32)
        beta = 0.1 * jax.random.normal(kb2, (1, dim), jnp.float32)
        mean = 0.1 * jax.random.normal(km, (1, dim), jnp.float32)
        var = 1.0 + 0.1 * jax.random.uniform(kv, (1, dim), jnp.float32)
        return gamma, beta, mean, var

    raw = {"enc": [], "dec": []}
    prev = input_dim + condition_dim
    for dim in hidden_dims:
        W, b = linear(prev, dim)
        raw["enc"].append((W, b) + bn(dim))
        prev = dim
    raw["mu"] = linear(hidden_dims[-1], latent_dim)
    raw["lv"] = linear(hidden_dims[-1], latent_dim)
    prev = latent_dim + condition_dim
    for dim in reversed(hidden_dims):
        W, b = linear(prev, dim)
        raw["dec"].append((W, b) + bn(dim))
        prev = dim
    raw["out"] = linear(hidden_dims[0], input_dim)
    return raw


# ----------------------------------------------------------------------------
# Host-side folding: BN(eval) into Linear, transpose for batch-on-lanes layout,
# fused mu/log_var head, decoder z/cond split, bf16 weights (f32 shifts).
# ----------------------------------------------------------------------------
def fold_params(raw, latent_dim):
    flat = []

    def fold(W, b, gamma, beta, mean, var):
        scale = gamma / jnp.sqrt(var + BN_EPS)              # (1, d_out)
        shift = beta - mean * scale
        Wt = (W * scale).T.astype(jnp.bfloat16)             # (d_out, d_in)
        st = (b * scale + shift).T                          # (d_out, 1) f32
        return Wt, st

    for layer in raw["enc"]:
        Wt, st = fold(*layer)
        flat += [Wt, st]

    W_head = jnp.concatenate([raw["mu"][0], raw["lv"][0]], axis=1)
    b_head = jnp.concatenate([raw["mu"][1], raw["lv"][1]], axis=1)
    flat += [W_head.T.astype(jnp.bfloat16), b_head.T]

    for i, layer in enumerate(raw["dec"]):
        Wt, st = fold(*layer)                                # (d_out, lat+cond)
        if i == 0:
            flat += [Wt[:, :latent_dim], Wt[:, latent_dim:], st]  # Wz^T, Wc^T
        else:
            flat += [Wt, st]

    flat += [raw["out"][0].T.astype(jnp.bfloat16), raw["out"][1].T]
    return flat


# ----------------------------------------------------------------------------
# Plain-JAX f32 reference using UNFOLDED params (explicit Linear/BN/ReLU path)
# ----------------------------------------------------------------------------
def reference_forward(x, cond, eps, raw):
    def layer(h, W, b, gamma, beta, mean, var):
        pre = h @ W + b
        pre = (pre - mean) / jnp.sqrt(var + BN_EPS) * gamma + beta
        return jnp.maximum(pre, 0.0)                 # Dropout = identity (eval)

    h = jnp.concatenate([x, cond], axis=1)
    for p in raw["enc"]:
        h = layer(h, *p)
    mu = h @ raw["mu"][0] + raw["mu"][1]
    log_var = h @ raw["lv"][0] + raw["lv"][1]
    z = mu + eps * jnp.exp(0.5 * log_var)
    h = jnp.concatenate([z, cond], axis=1)
    for p in raw["dec"]:
        h = layer(h, *p)
    x_rec = h @ raw["out"][0] + raw["out"][1]
    return x_rec, mu, log_var


# ----------------------------------------------------------------------------
if __name__ == "__main__":
    B = 256                                   # -> block_b=128, grid=(2,)
    input_dim, condition_dim, latent_dim = 16, 8, 8
    hidden_dims = [32, 16]

    key = jax.random.PRNGKey(0)
    k_x, k_c, k_eps, k_p = jax.random.split(key, 4)
    x = jax.random.normal(k_x, (B, input_dim), jnp.float32)
    cond = jax.random.normal(k_c, (B, condition_dim), jnp.float32)
    # eps plays the role of torch.randn_like(std) in reparameterize()
    eps = jax.random.normal(k_eps, (B, latent_dim), jnp.float32)

    raw = init_raw_params(k_p, input_dim, condition_dim, latent_dim, hidden_dims)
    params = tuple(fold_params(raw, latent_dim))

    x_rec, mu, log_var = cvae_forward(
        x, cond, eps, params,
        input_dim=input_dim, condition_dim=condition_dim,
        latent_dim=latent_dim, num_hidden=len(hidden_dims))
    jax.block_until_ready((x_rec, mu, log_var))

    # correctness vs. plain-JAX f32 reference (tolerances sized for bf16
    # weight quantization: ~0.4% relative per matmul operand)
    x_rec_r, mu_r, lv_r = reference_forward(x, cond, eps, raw)
    assert jnp.allclose(x_rec, x_rec_r, atol=1e-2, rtol=2e-2)
    assert jnp.allclose(mu, mu_r, atol=1e-2, rtol=2e-2)
    assert jnp.allclose(log_var, lv_r, atol=1e-2, rtol=2e-2)
    assert x_rec.shape == (B, input_dim) and mu.shape == (B, latent_dim)
    assert log_var.shape == (B, latent_dim)

    print("KERNEL_OK")
</pallas_src>

<mosaic_0001>
module attributes {stable_mosaic.version = 11 : i64} {
  func.func @kernel(%arg0: i32, %arg1: memref<32x128xf32, #tpu.memory_space<vmem>>, %arg2: memref<32x24xbf16, #tpu.memory_space<vmem>>, %arg3: memref<32x1xf32, #tpu.memory_space<vmem>>, %arg4: memref<16x32xbf16, #tpu.memory_space<vmem>>, %arg5: memref<16x1xf32, #tpu.memory_space<vmem>>, %arg6: memref<16x16xbf16, #tpu.memory_space<vmem>>, %arg7: memref<16x1xf32, #tpu.memory_space<vmem>>, %arg8: memref<16x8xbf16, #tpu.memory_space<vmem>>, %arg9: memref<16x8xbf16, #tpu.memory_space<vmem>>, %arg10: memref<16x1xf32, #tpu.memory_space<vmem>>, %arg11: memref<32x16xbf16, #tpu.memory_space<vmem>>, %arg12: memref<32x1xf32, #tpu.memory_space<vmem>>, %arg13: memref<16x32xbf16, #tpu.memory_space<vmem>>, %arg14: memref<16x1xf32, #tpu.memory_space<vmem>>, %arg15: memref<32x128xf32, #tpu.memory_space<vmem>>) attributes {dimension_semantics = [#tpu.dimension_semantics<parallel>], iteration_bounds = array<i64: 2>, scalar_prefetch = 0 : i64, scratch_operands = 0 : i64, tpu.core_type = #tpu.core_type<tc>, window_params = [{transform_indices = @transform_0, window_bounds = array<i64: 32, 128>}, {pipeline_mode = #tpu.pipeline_mode<synchronous>, transform_indices = @transform_1, window_bounds = array<i64: 32, 24>}, {pipeline_mode = #tpu.pipeline_mode<synchronous>, transform_indices = @transform_2, window_bounds = array<i64: 32, 1>}, {pipeline_mode = #tpu.pipeline_mode<synchronous>, transform_indices = @transform_3, window_bounds = array<i64: 16, 32>}, {pipeline_mode = #tpu.pipeline_mode<synchronous>, transform_indices = @transform_4, window_bounds = array<i64: 16, 1>}, {pipeline_mode = #tpu.pipeline_mode<synchronous>, transform_indices = @transform_5, window_bounds = array<i64: 16, 16>}, {pipeline_mode = #tpu.pipeline_mode<synchronous>, transform_indices = @transform_6, window_bounds = array<i64: 16, 1>}, {pipeline_mode = #tpu.pipeline_mode<synchronous>, transform_indices = @transform_7, window_bounds = array<i64: 16, 8>}, {pipeline_mode = #tpu.pipeline_mode<synchronous>, transform_indices = @transform_8, window_bounds = array<i64: 16, 8>}, {pipeline_mode = #tpu.pipeline_mode<synchronous>, transform_indices = @transform_9, window_bounds = array<i64: 16, 1>}, {pipeline_mode = #tpu.pipeline_mode<synchronous>, transform_indices = @transform_10, window_bounds = array<i64: 32, 16>}, {pipeline_mode = #tpu.pipeline_mode<synchronous>, transform_indices = @transform_11, window_bounds = array<i64: 32, 1>}, {pipeline_mode = #tpu.pipeline_mode<synchronous>, transform_indices = @transform_12, window_bounds = array<i64: 16, 32>}, {pipeline_mode = #tpu.pipeline_mode<synchronous>, transform_indices = @transform_13, window_bounds = array<i64: 16, 1>}, {transform_indices = @transform_14, window_bounds = array<i64: 32, 128>}]} {
    %c0 = arith.constant 0 : index
    %c0_0 = arith.constant 0 : index
    %0 = vector.load %arg1[%c0, %c0_0] : memref<32x128xf32, #tpu.memory_space<vmem>>, vector<32x128xf32>
    %1 = vector.extract_strided_slice %0 {offsets = [0, 0], sizes = [24, 128], strides = [1, 1]} : vector<32x128xf32> to vector<24x128xf32>
    %2 = vector.extract_strided_slice %0 {offsets = [16, 0], sizes = [8, 128], strides = [1, 1]} : vector<32x128xf32> to vector<8x128xf32>
    %3 = vector.extract_strided_slice %0 {offsets = [24, 0], sizes = [8, 128], strides = [1, 1]} : vector<32x128xf32> to vector<8x128xf32>
    %4 = arith.truncf %1 : vector<24x128xf32> to vector<24x128xbf16>
    %c0_1 = arith.constant 0 : index
    %c0_2 = arith.constant 0 : index
    %5 = vector.load %arg2[%c0_1, %c0_2] : memref<32x24xbf16, #tpu.memory_space<vmem>>, vector<32x24xbf16>
    %c0_3 = arith.constant 0 : index
    %c0_4 = arith.constant 0 : index
    %6 = vector.load %arg3[%c0_3, %c0_4] : memref<32x1xf32, #tpu.memory_space<vmem>>, vector<32x1xf32>
    %cst = arith.constant dense<0.000000e+00> : vector<32x128xf32>
    %7 = tpu.matmul %5, %4, %cst {dimension_numbers = #tpu.dot_dimension_numbers<[1], [0], [0], [1], [0, 0, 1, 1], [], []>} : vector<32x24xbf16>, vector<24x128xbf16>, vector<32x128xf32> -> vector<32x128xf32>
    %8 = vector.broadcast %6 : vector<32x1xf32> to vector<32x128xf32>
    %9 = arith.addf %7, %8 : vector<32x128xf32>
    %cst_5 = arith.constant 0.000000e+00 : f32
    %10 = vector.broadcast %cst_5 : f32 to vector<32x128xf32>
    %11 = arith.maximumf %9, %10 : vector<32x128xf32>
    %12 = arith.truncf %11 : vector<32x128xf32> to vector<32x128xbf16>
    %c0_6 = arith.constant 0 : index
    %c0_7 = arith.constant 0 : index
    %13 = vector.load %arg4[%c0_6, %c0_7] : memref<16x32xbf16, #tpu.memory_space<vmem>>, vector<16x32xbf16>
    %c0_8 = arith.constant 0 : index
    %c0_9 = arith.constant 0 : index
    %14 = vector.load %arg5[%c0_8, %c0_9] : memref<16x1xf32, #tpu.memory_space<vmem>>, vector<16x1xf32>
    %cst_10 = arith.constant dense<0.000000e+00> : vector<16x128xf32>
    %15 = tpu.matmul %13, %12, %cst_10 {dimension_numbers = #tpu.dot_dimension_numbers<[1], [0], [0], [1], [0, 0, 1, 1], [], []>} : vector<16x32xbf16>, vector<32x128xbf16>, vector<16x128xf32> -> vector<16x128xf32>
    %16 = vector.broadcast %14 : vector<16x1xf32> to vector<16x128xf32>
    %17 = arith.addf %15, %16 : vector<16x128xf32>
    %cst_11 = arith.constant 0.000000e+00 : f32
    %18 = vector.broadcast %cst_11 : f32 to vector<16x128xf32>
    %19 = arith.maximumf %17, %18 : vector<16x128xf32>
    %20 = arith.truncf %19 : vector<16x128xf32> to vector<16x128xbf16>
    %c0_12 = arith.constant 0 : index
    %c0_13 = arith.constant 0 : index
    %21 = vector.load %arg6[%c0_12, %c0_13] : memref<16x16xbf16, #tpu.memory_space<vmem>>, vector<16x16xbf16>
    %c0_14 = arith.constant 0 : index
    %c0_15 = arith.constant 0 : index
    %22 = vector.load %arg7[%c0_14, %c0_15] : memref<16x1xf32, #tpu.memory_space<vmem>>, vector<16x1xf32>
    %cst_16 = arith.constant dense<0.000000e+00> : vector<16x128xf32>
    %23 = tpu.matmul %21, %20, %cst_16 {dimension_numbers = #tpu.dot_dimension_numbers<[1], [0], [0], [1], [0, 0, 1, 1], [], []>} : vector<16x16xbf16>, vector<16x128xbf16>, vector<16x128xf32> -> vector<16x128xf32>
    %24 = vector.broadcast %22 : vector<16x1xf32> to vector<16x128xf32>
    %25 = arith.addf %23, %24 : vector<16x128xf32>
    %26 = vector.extract_strided_slice %25 {offsets = [0, 0], sizes = [8, 128], strides = [1, 1]} : vector<16x128xf32> to vector<8x128xf32>
    %27 = vector.extract_strided_slice %25 {offsets = [8, 0], sizes = [8, 128], strides = [1, 1]} : vector<16x128xf32> to vector<8x128xf32>
    %cst_17 = arith.constant 5.000000e-01 : f32
    %28 = vector.broadcast %cst_17 : f32 to vector<8x128xf32>
    %29 = arith.mulf %28, %27 : vector<8x128xf32>
    %30 = math.exp %29 : vector<8x128xf32>
    %31 = arith.mulf %3, %30 : vector<8x128xf32>
    %32 = arith.addf %26, %31 : vector<8x128xf32>
    %33 = arith.truncf %2 : vector<8x128xf32> to vector<8x128xbf16>
    %34 = arith.truncf %32 : vector<8x128xf32> to vector<8x128xbf16>
    %c0_18 = arith.constant 0 : index
    %c0_19 = arith.constant 0 : index
    %35 = vector.load %arg8[%c0_18, %c0_19] : memref<16x8xbf16, #tpu.memory_space<vmem>>, vector<16x8xbf16>
    %c0_20 = arith.constant 0 : index
    %c0_21 = arith.constant 0 : index
    %36 = vector.load %arg9[%c0_20, %c0_21] : memref<16x8xbf16, #tpu.memory_space<vmem>>, vector<16x8xbf16>
    %c0_22 = arith.constant 0 : index
    %c0_23 = arith.constant 0 : index
    %37 = vector.load %arg10[%c0_22, %c0_23] : memref<16x1xf32, #tpu.memory_space<vmem>>, vector<16x1xf32>
    %cst_24 = arith.constant dense<0.000000e+00> : vector<16x128xf32>
    %38 = tpu.matmul %35, %34, %cst_24 {dimension_numbers = #tpu.dot_dimension_numbers<[1], [0], [0], [1], [0, 0, 1, 1], [], []>} : vector<16x8xbf16>, vector<8x128xbf16>, vector<16x128xf32> -> vector<16x128xf32>
    %cst_25 = arith.constant dense<0.000000e+00> : vector<16x128xf32>
    %39 = tpu.matmul %36, %33, %cst_25 {dimension_numbers = #tpu.dot_dimension_numbers<[1], [0], [0], [1], [0, 0, 1, 1], [], []>} : vector<16x8xbf16>, vector<8x128xbf16>, vector<16x128xf32> -> vector<16x128xf32>
    %40 = arith.addf %38, %39 : vector<16x128xf32>
    %41 = vector.broadcast %37 : vector<16x1xf32> to vector<16x128xf32>
    %42 = arith.addf %40, %41 : vector<16x128xf32>
    %cst_26 = arith.constant 0.000000e+00 : f32
    %43 = vector.broadcast %cst_26 : f32 to vector<16x128xf32>
    %44 = arith.maximumf %42, %43 : vector<16x128xf32>
    %45 = arith.truncf %44 : vector<16x128xf32> to vector<16x128xbf16>
    %c0_27 = arith.constant 0 : index
    %c0_28 = arith.constant 0 : index
    %46 = vector.load %arg11[%c0_27, %c0_28] : memref<32x16xbf16, #tpu.memory_space<vmem>>, vector<32x16xbf16>
    %c0_29 = arith.constant 0 : index
    %c0_30 = arith.constant 0 : index
    %47 = vector.load %arg12[%c0_29, %c0_30] : memref<32x1xf32, #tpu.memory_space<vmem>>, vector<32x1xf32>
    %cst_31 = arith.constant dense<0.000000e+00> : vector<32x128xf32>
    %48 = tpu.matmul %46, %45, %cst_31 {dimension_numbers = #tpu.dot_dimension_numbers<[1], [0], [0], [1], [0, 0, 1, 1], [], []>} : vector<32x16xbf16>, vector<16x128xbf16>, vector<32x128xf32> -> vector<32x128xf32>
    %49 = vector.broadcast %47 : vector<32x1xf32> to vector<32x128xf32>
    %50 = arith.addf %48, %49 : vector<32x128xf32>
    %cst_32 = arith.constant 0.000000e+00 : f32
    %51 = vector.broadcast %cst_32 : f32 to vector<32x128xf32>
    %52 = arith.maximumf %50, %51 : vector<32x128xf32>
    %53 = arith.truncf %52 : vector<32x128xf32> to vector<32x128xbf16>
    %c0_33 = arith.constant 0 : index
    %c0_34 = arith.constant 0 : index
    %54 = vector.load %arg13[%c0_33, %c0_34] : memref<16x32xbf16, #tpu.memory_space<vmem>>, vector<16x32xbf16>
    %c0_35 = arith.constant 0 : index
    %c0_36 = arith.constant 0 : index
    %55 = vector.load %arg14[%c0_35, %c0_36] : memref<16x1xf32, #tpu.memory_space<vmem>>, vector<16x1xf32>
    %cst_37 = arith.constant dense<0.000000e+00> : vector<16x128xf32>
    %56 = tpu.matmul %54, %53, %cst_37 {dimension_numbers = #tpu.dot_dimension_numbers<[1], [0], [0], [1], [0, 0, 1, 1], [], []>} : vector<16x32xbf16>, vector<32x128xbf16>, vector<16x128xf32> -> vector<16x128xf32>
    %57 = vector.broadcast %55 : vector<16x1xf32> to vector<16x128xf32>
    %58 = arith.addf %56, %57 : vector<16x128xf32>
    %c0_38 = arith.constant 0 : index
    %c0_39 = arith.constant 0 : index
    %59 = vector.load %arg15[%c0_38, %c0_39] : memref<32x128xf32, #tpu.memory_space<vmem>>, vector<16x128xf32>
    tpu.vector_store %arg15[%c0_38, %c0_39], %58 {strides = array<i32>} : memref<32x128xf32, #tpu.memory_space<vmem>>, vector<16x128xf32>,
    %c16 = arith.constant 16 : index
    %c0_40 = arith.constant 0 : index
    %60 = vector.load %arg15[%c16, %c0_40] : memref<32x128xf32, #tpu.memory_space<vmem>>, vector<8x128xf32>
    tpu.vector_store %arg15[%c16, %c0_40], %26 {strides = array<i32>} : memref<32x128xf32, #tpu.memory_space<vmem>>, vector<8x128xf32>,
    %c24 = arith.constant 24 : index
    %c0_41 = arith.constant 0 : index
    %61 = vector.load %arg15[%c24, %c0_41] : memref<32x128xf32, #tpu.memory_space<vmem>>, vector<8x128xf32>
    tpu.vector_store %arg15[%c24, %c0_41], %27 {strides = array<i32>} : memref<32x128xf32, #tpu.memory_space<vmem>>, vector<8x128xf32>,
    return
  }
  func.func @transform_0(%arg0: i32) -> (i32, i32) {
    %c0_i32 = arith.constant 0 : i32
    %c0_i32_0 = arith.constant 0 : i32
    return %c0_i32, %arg0 : i32, i32
  }
  func.func @transform_1(%arg0: i32) -> (i32, i32) {
    %c0_i32 = arith.constant 0 : i32
    %c0_i32_0 = arith.constant 0 : i32
    %c0_i32_1 = arith.constant 0 : i32
    return %c0_i32, %c0_i32_0 : i32, i32
  }
  func.func @transform_2(%arg0: i32) -> (i32, i32) {
    %c0_i32 = arith.constant 0 : i32
    %c0_i32_0 = arith.constant 0 : i32
    %c0_i32_1 = arith.constant 0 : i32
    return %c0_i32, %c0_i32_0 : i32, i32
  }
  func.func @transform_3(%arg0: i32) -> (i32, i32) {
    %c0_i32 = arith.constant 0 : i32
    %c0_i32_0 = arith.constant 0 : i32
    %c0_i32_1 = arith.constant 0 : i32
    return %c0_i32, %c0_i32_0 : i32, i32
  }
  func.func @transform_4(%arg0: i32) -> (i32, i32) {
    %c0_i32 = arith.constant 0 : i32
    %c0_i32_0 = arith.constant 0 : i32
    %c0_i32_1 = arith.constant 0 : i32
    return %c0_i32, %c0_i32_0 : i32, i32
  }
  func.func @transform_5(%arg0: i32) -> (i32, i32) {
    %c0_i32 = arith.constant 0 : i32
    %c0_i32_0 = arith.constant 0 : i32
    %c0_i32_1 = arith.constant 0 : i32
    return %c0_i32, %c0_i32_0 : i32, i32
  }
  func.func @transform_6(%arg0: i32) -> (i32, i32) {
    %c0_i32 = arith.constant 0 : i32
    %c0_i32_0 = arith.constant 0 : i32
    %c0_i32_1 = arith.constant 0 : i32
    return %c0_i32, %c0_i32_0 : i32, i32
  }
  func.func @transform_7(%arg0: i32) -> (i32, i32) {
    %c0_i32 = arith.constant 0 : i32
    %c0_i32_0 = arith.constant 0 : i32
    %c0_i32_1 = arith.constant 0 : i32
    return %c0_i32, %c0_i32_0 : i32, i32
  }
  func.func @transform_8(%arg0: i32) -> (i32, i32) {
    %c0_i32 = arith.constant 0 : i32
    %c0_i32_0 = arith.constant 0 : i32
    %c0_i32_1 = arith.constant 0 : i32
    return %c0_i32, %c0_i32_0 : i32, i32
  }
  func.func @transform_9(%arg0: i32) -> (i32, i32) {
    %c0_i32 = arith.constant 0 : i32
    %c0_i32_0 = arith.constant 0 : i32
    %c0_i32_1 = arith.constant 0 : i32
    return %c0_i32, %c0_i32_0 : i32, i32
  }
  func.func @transform_10(%arg0: i32) -> (i32, i32) {
    %c0_i32 = arith.constant 0 : i32
    %c0_i32_0 = arith.constant 0 : i32
    %c0_i32_1 = arith.constant 0 : i32
    return %c0_i32, %c0_i32_0 : i32, i32
  }
  func.func @transform_11(%arg0: i32) -> (i32, i32) {
    %c0_i32 = arith.constant 0 : i32
    %c0_i32_0 = arith.constant 0 : i32
    %c0_i32_1 = arith.constant 0 : i32
    return %c0_i32, %c0_i32_0 : i32, i32
  }
  func.func @transform_12(%arg0: i32) -> (i32, i32) {
    %c0_i32 = arith.constant 0 : i32
    %c0_i32_0 = arith.constant 0 : i32
    %c0_i32_1 = arith.constant 0 : i32
    return %c0_i32, %c0_i32_0 : i32, i32
  }
  func.func @transform_13(%arg0: i32) -> (i32, i32) {
    %c0_i32 = arith.constant 0 : i32
    %c0_i32_0 = arith.constant 0 : i32
    %c0_i32_1 = arith.constant 0 : i32
    return %c0_i32, %c0_i32_0 : i32, i32
  }
  func.func @transform_14(%arg0: i32) -> (i32, i32) {
    %c0_i32 = arith.constant 0 : i32
    %c0_i32_0 = arith.constant 0 : i32
    return %c0_i32, %arg0 : i32, i32
  }
}

</mosaic_0001>

<bundles_post_ra>
// kernel: cvae_forward.1
= control target key start
LH: loop header
LB: loop body
LE: loop exit
PB: predicated region body
PF: predicated region fallthrough
CT: control target
= control target key end

     0   :  { %s1579_s0 = inlined_call_operand.vmem [shape: f32[32,256], index: 0, kind: input, shape index: {}]   ;;  %s1580_s1 = inlined_call_operand.vmem [shape: bf16[32,24], index: 1, kind: input, shape index: {}]   ;;  %s1581_s2 = inlined_call_operand.vmem [shape: f32[32,1], index: 2, kind: input, shape index: {}]   ;;  %s1582_s3 = inlined_call_operand.vmem [shape: bf16[16,32], index: 3, kind: input, shape index: {}]   ;;  %s1583_s4 = inlined_call_operand.vmem [shape: f32[16,1], index: 4, kind: input, shape index: {}]   ;;  %s1584_s5 = inlined_call_operand.vmem [shape: bf16[16,16], index: 5, kind: input, shape index: {}]   ;;  %s1585_s6 = inlined_call_operand.vmem [shape: f32[16,1], index: 6, kind: input, shape index: {}]   ;;  %s1586_s7 = inlined_call_operand.vmem [shape: bf16[16,8], index: 7, kind: input, shape index: {}]   ;;  %s1587_s8 = inlined_call_operand.vmem [shape: bf16[16,8], index: 8, kind: input, shape index: {}]   ;;  %s1588_s9 = inlined_call_operand.vmem [shape: f32[16,1], index: 9, kind: input, shape index: {}]   ;;  %s1589_s10 = inlined_call_operand.vmem [shape: bf16[32,16], index: 10, kind: input, shape index: {}]   ;;  %s1590_s11 = inlined_call_operand.vmem [shape: f32[32,1], index: 11, kind: input, shape index: {}]   ;;  %s1591_s12 = inlined_call_operand.vmem [shape: bf16[16,32], index: 12, kind: input, shape index: {}]   ;;  %s1592_s13 = inlined_call_operand.vmem [shape: f32[16,1], index: 13, kind: input, shape index: {}]   ;;  %s1593_s14 = inlined_call_operand.vmem [shape: f32[32,256], index: 14, kind: output, shape index: {}]  }
   0x1   :  { %1595 = sst [smem:[#allocation4_spill]] %s1579_s0 }
   0x2   :  { %s1395_s29 = smov 0   ;;  %s1397_s30 = smov 0  }
   0x3   :  { %s1399_s15 = smov 0  }
   0x4 LB: > { %s1594_s16 = sadd.s32 4294967295, %s1315_s15   ;;  %s1412_s17 = sadd.s32 1, %s1315_s15   ;;  %s1315_s15 = sphi %s1399_s15, %s1601_s15   ;;  %s1311_s30 = sphi %s1397_s30, %s1600_s30   ;;  %s1307_s29 = sphi %s1395_s29, %s1599_s29  }
   0x5   : > { %s28_s18 = ssub.s32 %s1315_s15, %s1412_s17  ;;  %s31_s19 = sadd.s32 1, %s1311_s30 }
   0x6   : > { %p29_p0 = scmp.eq.s32.totalorder %s28_s18, 0  ;;  %p38_p1 = scmp.ne.s32.totalorder %s1311_s30, %s1307_s29 }
   0x7   : > { %p39_p2 = scmp.eq.s32.totalorder %s1315_s15, 0  ;;  %p341_p3 = scmp.eq.s32.totalorder %s1594_s16, 1 }
   0x8   : > { %s1423_s20 = scalar_select %p29_p0, %s1311_s30, %s31_s19  }
   0x9   : > { %p40_p4 = por %p39_p2, %p38_p1  ;;  %p1425_p5 = por %p341_p3, %p38_p1 }
   0xa   : > { %p1157_p6 = scmp.ge.s32.totalorder %s1315_s15, 2 }
   0xc   : > { %402 = sbr.rel (%p1157_p6) target bundleno = 31 (0x1f), region = 68 }
  0x13   : > { %405 = sbr.rel (!%p40_p4) target bundleno = 31 (0x1f), region = 72  ;;  %s407_s22 = sand.u32 (%p40_p4), 1, %s1311_s30  }
  0x14   : > { %s1159_s23 = sshll.u32 (%p40_p4), %s1315_s15, 3  ;;  %s1158_s24 = sshll.u32 (%p40_p4), %s407_s22, 5 }
  0x15   : > { %s1597_s0 = sld [smem:[#allocation4_spill]] (%p40_p4)  ;;  %s409_s28 = scalar_lea.vmem (%p40_p4), [#allocation2], %s1158_s24 }
  0x1b   : > { %s411_s27 = scalar_lea.vmem %s1597_s0, %s1159_s23 }
  0x1c   : > { %v445_v0 = vld [vmem:[%s411_s27] sm:$0xff]  ;;  %v447_v1 = vld [vmem:[%s411_s27 + $0x10] sm:$0xff] }
  0x1d   : > { %v449_v2 = vld [vmem:[%s411_s27 + $0x20] sm:$0xff]  ;;  %446 = vst [vmem:[%s409_s28] sm:$0xff] %v445_v0  ;;  %448 = vst [vmem:[%s409_s28 + $0x8] sm:$0xff] %v447_v1  ;;  %v451_v3 = vld [vmem:[%s411_s27 + $0x30] sm:$0xff] }
  0x1e   : > { %450 = vst [vmem:[%s409_s28 + $0x10] sm:$0xff] %v449_v2  ;;  %452 = vst [vmem:[%s409_s28 + $0x18] sm:$0xff] %v451_v3 }
  0x1f PF: > { %p1160_p7 = scmp.ge.s32.totalorder %s1315_s15, 1  ;;  %p457_p8 = scmp.lt.s32.totalorder %s1315_s15, 3 }
  0x21   : > { %p458_p9 = pnand %p1160_p7, %p457_p8 }
  0x22   : > { %s464_s18 = sand.u32 (!%p458_p9), 1, %s1307_s29   ;;  %v1282_v4 = vld [vmem:[%s1580_s1] sm:$0xff] (!%p458_p9)   ;;  %vm553_vm0 = vcmask (!%p458_p9), 195584   ;;  %v521_v6 = vld [vmem:[%s1581_s2 + $0x10] sm:$0xff] (!%p458_p9)  ;;  %v1317_v10 = vmov (!%p458_p9), 0   ;;  %vm560_vm1 = vcmask (!%p458_p9), 1043456  }
  0x23   : > { %461 = sbr.rel (%p458_p9) target bundleno = 1419 (0x58b), region = 110  ;;  %s1438_s19 = sshll.u32 (!%p458_p9), %s464_s18, 5  ;;  %v519_v5 = vld [vmem:[%s1581_s2] sm:$0xff] (!%p458_p9)  ;;  %1208 = vmatprep.mubr.msk.bf16.mxu0 (!%p458_p9), %vm553_vm0, %v1282_v4  ;;  %1280 = vset.pattern.permute.xlu0 (!%p458_p9), %v1317_v10  ;;  %v520_v13 = vld [vmem:[%s1581_s2 + $0x8] sm:$0xff] (!%p458_p9)  ;;  %v522_v14 = vld [vmem:[%s1581_s2 + $0x18] sm:$0xff] (!%p458_p9)  ;;  %v1318_v29 = vmov (!%p458_p9), 0.0  }
  0x24   : > { %s1450_s28 = scalar_lea.vmem (!%p458_p9), [#allocation2], %s1438_s19  ;;  %525 = vperm.xlu0 (!%p458_p9), %1280, %v519_v5   ;;  %1281 = vset.pattern.permute.xlu1 (!%p458_p9), %v1317_v10  ;;  %v1283_v16 = vld [vmem:[%s1580_s1 + $0x8] sm:$0xff] (!%p458_p9)   ;;  %v621_v17 = vld [vmem:[%s1583_s4] sm:$0xff] (!%p458_p9)  ;;  %v885_v25 = vld [vmem:[%s1590_s11 + $0x10] sm:$0xff] (!%p458_p9)  ;;  %vm1319_vm2 = vmmov (!%p458_p9), 0   ;;  %vm638_vm3 = vcmask (!%p458_p9), 261120  }
  0x25   : > { %v509_v7 = vld [vmem:[%s1450_s28] sm:$0xff] (!%p458_p9)  ;;  %v510_v8 = vld [vmem:[%s1450_s28 + $0x8] sm:$0xff] (!%p458_p9)  ;;  %v511_v9 = vld [vmem:[%s1450_s28 + $0x10] sm:$0xff] (!%p458_p9)  ;;  %535 = vperm.xlu1 (!%p458_p9), %1281, %v521_v6   ;;  %1212 = vmatprep.subr.bf16.mxu1 (!%p458_p9), %v1318_v29  ;;  %vm705_vm4 = vcmask (!%p458_p9), 130048   ;;  %vm767_vm5 = vcmask (!%p458_p9), 64512   ;;  %s1530_s29 = scalar_lea.vmem (!%p458_p9), [#allocation3], %s1438_s19 }
  0x26   : > { %v513_v11 = vpack.c.bf16 (!%p458_p9), %v510_v8, %v509_v7  ;;  %v514_v12 = vpack.c.bf16 (!%p458_p9), %v511_v9, %v511_v9  ;;  %v622_v18 = vld [vmem:[%s1583_s4 + $0x8] sm:$0xff] (!%p458_p9)  ;;  %v688_v20 = vld [vmem:[%s1585_s6] sm:$0xff] (!%p458_p9)  ;;  %v886_v26 = vld [vmem:[%s1590_s11 + $0x18] sm:$0xff] (!%p458_p9)  ;;  %1216 = vmatprep.mubr.msk.bf16.mxu1 (!%p458_p9), %vm1319_vm2, %v1318_v29 }
  0x27   : > { %v689_v19 = vld [vmem:[%s1585_s6 + $0x8] sm:$0xff] (!%p458_p9)  ;;  %v760_v21 = vld [vmem:[%s1588_s9] sm:$0xff] (!%p458_p9)  ;;  %v512_v8 = vld [vmem:[%s1450_s28 + $0x18] sm:$0xff] (!%p458_p9) }
  0x28   : > { %1204 = vmatprep.subr.bf16.mxu0 (!%p458_p9), %v513_v11  ;;  %v562_v15 = vsel (!%p458_p9), %vm560_vm1, %v514_v12, 0  ;;  %530 = vperm.xlu0 (!%p458_p9), %1280, %v520_v13   ;;  %v761_v22 = vld [vmem:[%s1588_s9 + $0x8] sm:$0xff] (!%p458_p9)  ;;  %v883_v23 = vld [vmem:[%s1590_s11] sm:$0xff] (!%p458_p9) }
  0x29   : > { %1205 = vmatpush3.bf16.msra.mxu0 (!%p458_p9), %v513_v11  ;;  %540 = vperm.xlu1 (!%p458_p9), %1281, %v522_v14   ;;  %v884_v24 = vld [vmem:[%s1590_s11 + $0x8] sm:$0xff] (!%p458_p9)  ;;  %v980_v27 = vld [vmem:[%s1592_s13] sm:$0xff] (!%p458_p9) }
  0x2a   : > { %1252 = vmatprep.subr.msk.bf16.mxu0 %vm560_vm1, %v514_v12  ;;  %v981_v28 = vld [vmem:[%s1592_s13 + $0x8] sm:$0xff]  ;;  %v1284_v48 = vld [vmem:[%s1582_s3] sm:$0xff]   ;;  %s1598_s25 = sadd.s32 (%p1425_p5), 4294967295, %s1315_s15  }
  0x2b   : > { %v1285_v60 = vld [vmem:[%s1584_s5] sm:$0xff]   ;;  %s1182_s26 = sshll.u32 (%p1425_p5), %s1598_s25, 3 }
  0x2c   : > { %625 = vperm.xlu0 %1280, %v621_v17   ;;  %v1286_v61 = vld [vmem:[%s1587_s8] sm:$0xff]   ;;  %s1053_s22 = scalar_lea.vmem (%p1425_p5), %s1593_s14, %s1182_s26 }
  0x2d   : > { %1207 = vmatpush3.bf16.msra.mxu0 %v562_v15  ;;  %630 = vperm.xlu1 %1281, %v622_v18   ;;  %v1287_v14 = vld [vmem:[%s1586_s7] sm:$0xff]  }
  0x2e   : > { %1220 = vmatprep.subr.bf16.mxu0 %v1318_v29 }
  0x30   : > { %1209 = vmatmul.mubr.msk.bf16.vlgmr.msra.gmra.mrb[0].mxu0 %vm553_vm0, %v1283_v16  ;;  %697 = vperm.xlu0 %1280, %v689_v19   ;;  %v1288_v19 = vld [vmem:[%s1589_s10] sm:$0xff]  }
  0x31   : > { %692 = vperm.xlu1 %1281, %v688_v20   ;;  %1222 = vmatprep.mubr.msk.bf16.mxu0 %vm1319_vm2, %v1318_v29 }
  0x34   : > { %866 = vperm.xlu0 %1280, %v760_v21  }
  0x35   : > { %871 = vperm.xlu1 %1281, %v761_v22  }
  0x38   : > { %889 = vperm.xlu0 %1280, %v883_v23  }
  0x39   : > { %894 = vperm.xlu1 %1281, %v884_v24  }
  0x3c   : > { %899 = vperm.xlu0 %1280, %v885_v25  }
  0x3d   : > { %904 = vperm.xlu1 %1281, %v886_v26  }
  0x40   : > { %984 = vperm.xlu0 %1280, %v980_v27  }
  0x41   : > { %989 = vperm.xlu1 %1281, %v981_v28  }
  0xa3   : > { %v526_v31 = vpop.permute.xlu0 %525 }
  0xa4   : > { %v536_v30 = vpop.permute.xlu1 %535 }
  0xa7   : > { %v531_v38 = vpop.permute.xlu0 %530 }
  0xa8   : > { %v541_v35 = vpop.permute.xlu1 %540 }
  0xab   : > { %v626_v49 = vpop.permute.xlu0 %625 }
  0xac   : > { %v631_v53 = vpop.permute.xlu1 %630 }
  0xaf   : > { %v698_v2 = vpop.permute.xlu0 %697 }
  0xb0   : > { %v693_v62 = vpop.permute.xlu1 %692 }
  0xb3   : > { %v867_v23 = vpop.permute.xlu0 %866 }
  0xb4   : > { %v872_v28 = vpop.permute.xlu1 %871 }
 0x103   : > { %v1210_v32 = vpop.f32.mrb[0].mxu0 }
 0x104   : > { %v607_v33 = vadd.f32 %v1210_v32, %v536_v30  ;;  %v598_v34 = vpop.f32.mrb[1].mxu0 }
 0x105   : > { %v599_v36 = vadd.f32 %v598_v34, %v526_v31  ;;  %v1211_v37 = vpop.f32.mrb[2].mxu0  ;;  %v1289_v34 = vld [vmem:[%s1589_s10 + $0x8] sm:$0xff]  }
 0x106   : > { %v610_v39 = vadd.f32 %v1211_v37, %v541_v35  ;;  %v601_v40 = vpop.f32.mrb[3].mxu0  ;;  %v615_v42 = vmax.f32 %v607_v33, 0.0  ;;  %v890_v35 = vpop.permute.xlu0 %889 }
 0x107   : > { %v602_v41 = vadd.f32 %v601_v40, %v531_v38  ;;  %v613_v44 = vmax.f32 %v599_v36, 0.0  ;;  %v895_v36 = vpop.permute.xlu1 %894 }
 0x108   : > { %v616_v43 = vmax.f32 %v610_v39, 0.0 }
 0x109   : > { %v614_v45 = vmax.f32 %v602_v41, 0.0 }
 0x10a   : > { %v618_v46 = vpack.c.bf16 %v616_v43, %v615_v42  ;;  %v900_v37 = vpop.permute.xlu0 %899 }
 0x10b   : > { %v617_v47 = vpack.c.bf16 %v614_v45, %v613_v44  ;;  %v905_v41 = vpop.permute.xlu1 %904 }
 0x10d   : > { %1213 = vmatpush3.bf16.msra.mxu1 %v617_v47 }
 0x10e   : > { %1214 = vmatprep.subr.bf16.mxu1 %v1318_v29 }
 0x111   : > { %1215 = vmatpush3.bf16.msra.mxu1 %v618_v46 }
 0x112   : > { %1226 = vmatprep.subr.bf16.mxu1 %v1318_v29 }
 0x114   : > { %1217 = vmatmul.mubr.msk.bf16.vlgmr.msra.gmra.mrb[0].mxu1 %vm638_vm3, %v1284_v48 }
 0x115   : > { %1227 = vmatpush3.bf16.msra.mxu1 %v562_v15  ;;  %1228 = vmatprep.mubr.msk.bf16.mxu1 %vm1319_vm2, %v1318_v29 }
 0x11c   : > { %1229 = vmatmul.mubr.msk.bf16.vlgmr.msra.gmra.mrb[4].mxu1 %vm767_vm5, %v1286_v61 }
 0x11d   : > { %1240 = vmatprep.mubr.msk.bf16.mxu1 %vm705_vm4, %v1288_v19 }
 0x1e7   : > { %v676_v50 = vpop.f32.mrb[0].mxu1 }
 0x1e8   : > { %v677_v51 = vadd.f32 %v676_v50, %v626_v49  ;;  %v1218_v52 = vpop.f32.mrb[1].mxu1 }
 0x1e9   : > { %v679_v54 = vpop.f32.mrb[2].mxu1 }
 0x1ea   : > { %v680_v55 = vadd.f32 %v679_v54, %v631_v53  ;;  %v1219_v56 = vpop.f32.mrb[3].mxu1  ;;  %v683_v57 = vmax.f32 %v677_v51, 0.0  ;;  %v1290_v53 = vld [vmem:[%s1591_s12] sm:$0xff]   ;;  %v985_v54 = vpop.permute.xlu0 %984 }
 0x1ec   : > { %v684_v58 = vmax.f32 %v680_v55, 0.0 }
 0x1ee   : > { %v685_v59 = vpack.c.bf16 %v684_v58, %v683_v57  ;;  %v990_v58 = vpop.permute.xlu1 %989 }
 0x1ef   : > { %v805_v15 = vpop.f32.mrb[4].mxu1 }
 0x1f0   : > { %1221 = vmatpush3.bf16.msra.mxu0 %v685_v59  ;;  %v1230_v16 = vpop.f32.mrb[5].mxu1 }
 0x1f1   : > { %1232 = vmatprep.subr.bf16.mxu0 %v1318_v29  ;;  %v808_v17 = vpop.f32.mrb[6].mxu1 }
 0x1f2   : > { %v1231_v18 = vpop.f32.mrb[7].mxu1 }
 0x1f3   : > { %1223 = vmatmul.mubr.msk.bf16.vlgmr.msra.gmra.mrb[4].mxu0 %vm705_vm4, %v1285_v60 }
 0x1f4   : > { %1234 = vmatprep.mubr.msk.bf16.mxu0 %vm1319_vm2, %v1318_v29 }
 0x2c6   : > { %v743_v63 = vpop.f32.mrb[4].mxu0 }
 0x2c7   : > { %v744_v0 = vadd.f32 %v743_v63, %v693_v62  ;;  %v1224_v1 = vpop.f32.mrb[5].mxu0 }
 0x2c8   : > { %v746_v3 = vpop.f32.mrb[6].mxu0 }
 0x2c9   : > { %1043 = vst [vmem:[%s1530_s29 + $0x10] sm:$0xff] %v744_v0  ;;  %v747_v4 = vadd.f32 %v746_v3, %v698_v2  ;;  %v1225_v5 = vpop.f32.mrb[7].mxu0 }
 0x2cb   : > { %v750_v6 = vmul.f32 0.5, %v747_v4  ;;  %1044 = vst [vmem:[%s1530_s29 + $0x18] sm:$0xff] %v747_v4 }
 0x2cd   : > { %v751_v7 = vmul.f32 1.442695, %v750_v6 }
 0x2cf   : > { %1291 = vpow2.f32 %v751_v7 }
 0x2d0   : > { %v1091_v63 = vld [vmem:[%s1530_s29 + $0x10] sm:$0xff] (%p1425_p5) }
 0x2d1   : > { %1092 = vst [vmem:[%s1053_s22 + $0x20] sm:$0xff] (%p1425_p5), %v1091_v63 }
 0x2d9   : > { %v1292_v9 = vpop.eup %1291 }
 0x2da   : > { %v753_v10 = vmul.f32 %v1292_v9, %v512_v8 }
 0x2dc   : > { %v754_v11 = vadd.f32 %v753_v10, %v744_v0  ;;  %v1093_v0 = vld [vmem:[%s1530_s29 + $0x18] sm:$0xff] (%p1425_p5) }
 0x2dd   : > { %1094 = vst [vmem:[%s1053_s22 + $0x30] sm:$0xff] (%p1425_p5), %v1093_v0 }
 0x2de   : > { %v755_v12 = vpack.c.bf16 %v754_v11, %v754_v11 }
 0x2e0   : > { %v821_v13 = vsel %vm560_vm1, %v755_v12, 0 }
 0x2e1   : > { %1233 = vmatpush3.bf16.msra.mxu0 %v821_v13 }
 0x2e2   : > { %1244 = vmatprep.subr.bf16.mxu0 %v1318_v29 }
 0x2e4   : > { %1235 = vmatmul.mubr.msk.bf16.vlgmr.msra.gmra.mrb[8].mxu0 %vm767_vm5, %v1287_v14 }
 0x2e5   : > { %1248 = vmatprep.mubr.msk.bf16.mxu0 %vm1319_vm2, %v1318_v29 }
 0x3b7   : > { %v857_v20 = vpop.f32.mrb[8].mxu0 }
 0x3b8   : > { %v858_v21 = vadd.f32 %v857_v20, %v805_v15  ;;  %v1236_v22 = vpop.f32.mrb[9].mxu0 }
 0x3b9   : > { %v860_v24 = vpop.f32.mrb[10].mxu0 }
 0x3ba   : > { %v874_v25 = vadd.f32 %v867_v23, %v858_v21  ;;  %v861_v26 = vadd.f32 %v860_v24, %v808_v17  ;;  %v1237_v27 = vpop.f32.mrb[11].mxu0 }
 0x3bc   : > { %v875_v30 = vadd.f32 %v872_v28, %v861_v26  ;;  %v876_v31 = vmax.f32 %v874_v25, 0.0 }
 0x3be   : > { %v877_v32 = vmax.f32 %v875_v30, 0.0 }
 0x3c0   : > { %v878_v33 = vpack.c.bf16 %v877_v32, %v876_v31 }
 0x3c2   : > { %1238 = vmatprep.subr.bf16.mxu1 %v878_v33 }
 0x3c3   : > { %1239 = vmatpush3.bf16.msra.mxu1 %v878_v33 }
 0x3c6   : > { %1241 = vmatmul.mubr.msk.bf16.vlgmr.msra.gmra.mrb[8].mxu1 %vm705_vm4, %v1289_v34 }
 0x499   : > { %v1242_v38 = vpop.f32.mrb[8].mxu1 }
 0x49a   : > { %v966_v39 = vadd.f32 %v1242_v38, %v900_v37  ;;  %v957_v40 = vpop.f32.mrb[9].mxu1 }
 0x49b   : > { %v958_v42 = vadd.f32 %v957_v40, %v890_v35  ;;  %v1243_v43 = vpop.f32.mrb[10].mxu1 }
 0x49c   : > { %v969_v44 = vadd.f32 %v1243_v43, %v905_v41  ;;  %v960_v45 = vpop.f32.mrb[11].mxu1  ;;  %v974_v47 = vmax.f32 %v966_v39, 0.0 }
 0x49d   : > { %v961_v46 = vadd.f32 %v960_v45, %v895_v36  ;;  %v972_v49 = vmax.f32 %v958_v42, 0.0 }
 0x49e   : > { %v975_v48 = vmax.f32 %v969_v44, 0.0 }
 0x49f   : > { %v973_v50 = vmax.f32 %v961_v46, 0.0 }
 0x4a0   : > { %v977_v51 = vpack.c.bf16 %v975_v48, %v974_v47 }
 0x4a1   : > { %v976_v52 = vpack.c.bf16 %v973_v50, %v972_v49 }
 0x4a3   : > { %1245 = vmatpush3.bf16.msra.mxu0 %v976_v52 }
 0x4a4   : > { %1246 = vmatprep.subr.bf16.mxu0 %v1318_v29 }
 0x4a7   : > { %1247 = vmatpush3.bf16.msra.mxu0 %v977_v51 }
 0x4aa   : > { %1249 = vmatmul.mubr.msk.bf16.vlgmr.msra.gmra.mrb[12].mxu0 %vm638_vm3, %v1290_v53 }
 0x57c   : > { %1051 = sbr.rel (!%p1425_p5) target bundleno = 1419 (0x58b), region = 118 }
 0x57d   : > { %v1034_v55 = vpop.f32.mrb[12].mxu0 }
 0x57e   : > { %v1035_v56 = vadd.f32 %v1034_v55, %v985_v54  ;;  %v1250_v57 = vpop.f32.mrb[13].mxu0 }
 0x57f   : > { %v1037_v59 = vpop.f32.mrb[14].mxu0 }
 0x580   : > { %1041 = vst [vmem:[%s1530_s29] sm:$0xff] %v1035_v56  ;;  %v1038_v60 = vadd.f32 %v1037_v59, %v990_v58  ;;  %v1251_v61 = vpop.f32.mrb[15].mxu0 }
 0x582   : > { %1042 = vst [vmem:[%s1530_s29 + $0x8] sm:$0xff] %v1038_v60 }
 0x587   : > { %v1087_v29 = vld [vmem:[%s1530_s29] sm:$0xff] }
 0x588   : > { %1088 = vst [vmem:[%s1053_s22] sm:$0xff] %v1087_v29 }
 0x589   : > { %v1089_v62 = vld [vmem:[%s1530_s29 + $0x8] sm:$0xff] }
 0x58a   : > { %1090 = vst [vmem:[%s1053_s22 + $0x10] sm:$0xff] %v1089_v62 }
 0x58b PF: > { %p21_p10 = scmp.ge.s32.totalorder %s1412_s17, 4   ;;  %s1599_s29 = smov %s1311_s30 }
 0x58c   : > { %s1600_s30 = smov %s1423_s20  ;;  %s1601_s15 = smov %s1412_s17 }
 0x58d   :  { %23 = sbr.rel (!%p21_p10) target bundleno = 4 (0x4), region = 187 }

</bundles_post_ra>
